<compile_context>
chip_gen: v5e
topology: v5e:2x2
jax: 0.10.0
libtpu: 0.0.40
codegen_flags: <defaults>
</compile_context>

<pallas_src>
import functools

import jax
import jax.numpy as jnp
from jax.experimental import pallas as pl
from jax.experimental.pallas import tpu as pltpu

_LANE = 128


def _round_up(a, b):
    return pl.cdiv(a, b) * b


def _chip_params():
    """Best-effort (num_tensorcores, vmem_budget_bytes, vmem_limit_bytes)."""
    name = ""
    try:
        name += " " + str(pltpu.get_tpu_info()).lower()
    except Exception:
        pass
    try:
        name += " " + jax.devices()[0].device_kind.lower()
    except Exception:
        pass
    if ("v7" in name) or ("7x" in name):
        # v7x: 2 TCs/chip, 64 MiB VMEM per TC.
        return 2, 40 * 1024 * 1024, 48 * 1024 * 1024
    if "v6" in name:
        return 1, 24 * 1024 * 1024, 32 * 1024 * 1024
    if "v5" in name:
        return 1, 12 * 1024 * 1024, 20 * 1024 * 1024
    # Unknown chip: conservative settings that fit every generation.
    return 1, 12 * 1024 * 1024, 20 * 1024 * 1024


def _gap_kernel(x_ref, o_ref, acc_ref, *, inv_hw, hw, hw_tile):
    # x_ref:   (ROW_TILE, HW_TILE) input block
    # o_ref:   (ROW_TILE, 1) output block (resident across the hw grid axis)
    # acc_ref: (ROW_TILE, 1) f32 accumulator scratch
    k = pl.program_id(1)
    last = pl.num_programs(1) - 1

    @pl.when(k == 0)
    def _():
        acc_ref[...] = jnp.zeros_like(acc_ref)

    ragged = (hw % hw_tile) != 0  # static (trace-time) check

    if not ragged:
        acc_ref[...] += jnp.sum(
            x_ref[...].astype(jnp.float32), axis=-1, keepdims=True)
    else:
        # Steady state: unmasked sum (no extra VALU work per element).
        @pl.when(k < last)
        def _():
            acc_ref[...] += jnp.sum(
                x_ref[...].astype(jnp.float32), axis=-1, keepdims=True)

        # Last hw tile only: mask out-of-range lanes so padding garbage never
        # enters the sum.
        @pl.when(k == last)
        def _():
            x = x_ref[...].astype(jnp.float32)
            col = jax.lax.broadcasted_iota(jnp.int32, x.shape, dimension=1)
            x = jnp.where(col + k * hw_tile < hw, x, 0.0)
            acc_ref[...] += jnp.sum(x, axis=-1, keepdims=True)

    @pl.when(k == last)
    def _():
        # inv_hw is a trace-time Python float literal (no captured constants).
        o_ref[...] = (acc_ref[...] * inv_hw).astype(o_ref.dtype)


def global_avg_pool_2d(x):
    """Global average pooling: (N, C, H, W) -> (N, C, 1, 1)."""
    N, C, H, W = x.shape
    rows = N * C
    hw = H * W

    out_dtype = x.dtype if jnp.issubdtype(x.dtype, jnp.floating) else jnp.float32

    itemsize = jnp.dtype(x.dtype).itemsize
    out_itemsize = jnp.dtype(out_dtype).itemsize
    # Sublane packing: 8 rows for 32-bit, 16 for 16-bit, 32 for 8-bit dtypes.
    sublane = max(8, 32 // itemsize)

    num_tc, vmem_budget, vmem_limit = _chip_params()

    # --- VMEM accounting (uses lane-PADDED widths). ------------------------
    # Input blocks are multi-buffered (3-deep); the (row_tile, 1) output block
    # (double-buffered) and the f32 accumulator scratch pad to 128 lanes.
    buffer_count = 3
    per_row_fixed = 2 * _LANE * out_itemsize + _LANE * 4

    def per_row_cost(hw_tile_padded):
        return buffer_count * hw_tile_padded * itemsize + per_row_fixed

    hw_pad_full = _round_up(hw, _LANE)

    # --- hw (reduction) tile ------------------------------------------------
    if sublane * per_row_cost(hw_pad_full) <= vmem_budget:
        # Full spatial extent fits with at least one sublane group of rows.
        hw_tile = hw
        hw_tile_padded = hw_pad_full
        n_hw = 1
    else:
        # Balanced tiles, multiples of 128 lanes; ragged tail masked in-kernel.
        max_hw_tile = (vmem_budget // sublane - per_row_fixed) // (buffer_count * itemsize)
        max_hw_tile = max(_LANE, max_hw_tile // _LANE * _LANE)
        n_hw = pl.cdiv(hw, max_hw_tile)
        hw_tile = min(_round_up(pl.cdiv(hw, n_hw), _LANE), max_hw_tile)
        n_hw = pl.cdiv(hw, hw_tile)
        hw_tile_padded = hw_tile

    # --- row tile -------------------------------------------------------------
    rows_ceil = _round_up(rows, sublane)
    row_tile = vmem_budget // per_row_cost(hw_tile_padded)
    row_tile = max(sublane, row_tile // sublane * sublane)
    row_tile = min(row_tile, rows_ceil)
    n_row = pl.cdiv(rows, row_tile)

    # Only split rows for parallelism on multi-TensorCore parts (v7x); on
    # 1-TC chips the grid is a serial loop and splitting is pure overhead.
    if num_tc >= 2:
        if n_row == 1 and rows > sublane:
            row_tile = _round_up(pl.cdiv(rows, num_tc), sublane)
            n_row = pl.cdiv(rows, row_tile)
        elif n_row > 1 and n_row % num_tc != 0:
            # Best-effort balance so each core gets the same number of tiles.
            n_row_bal = _round_up(n_row, num_tc)
            row_tile = max(sublane, _round_up(pl.cdiv(rows, n_row_bal), sublane))
            n_row = pl.cdiv(rows, row_tile)
    # TODO(synk): verify in xprof that the "parallel" rows axis shards across
    # both v7x TensorCores; otherwise switch to CORE_PARALLEL / pl.core_map.

    x2 = x.reshape(rows, hw)

    kernel = functools.partial(_gap_kernel, inv_hw=1.0 / hw, hw=hw, hw_tile=hw_tile)

    cost = pl.CostEstimate(
        flops=rows * hw,
        transcendentals=0,
        bytes_accessed=rows * hw * itemsize + rows * out_itemsize,
    )

    def _make_call(use_buffered):
        in_spec_kwargs = {"pipeline_mode": pl.Buffered(3)} if use_buffered else {}
        return pl.pallas_call(
            kernel,
            out_shape=jax.ShapeDtypeStruct((rows, 1), out_dtype),
            grid_spec=pltpu.PrefetchScalarGridSpec(
                num_scalar_prefetch=0,
                grid=(n_row, n_hw),
                in_specs=[pl.BlockSpec((row_tile, hw_tile),
                                       lambda i, k: (i, k),
                                       **in_spec_kwargs)],
                out_specs=pl.BlockSpec((row_tile, 1), lambda i, k: (i, 0)),
                scratch_shapes=[pltpu.VMEM((row_tile, 1), jnp.float32)],
            ),
            compiler_params=pltpu.CompilerParams(
                dimension_semantics=("parallel", "arbitrary"),
                vmem_limit_bytes=vmem_limit,
            ),
            cost_estimate=cost,
        )

    # Triple-buffer only pays off when there are >=3 grid steps to pipeline.
    use_buffered = (n_row * n_hw) >= 3
    if use_buffered:
        try:
            out = _make_call(True)(x2)
        except Exception:
            # Fallback: default double-buffering if deep pipelining is not
            # supported by this jax/Mosaic version for this configuration.
            out = _make_call(False)(x2)
    else:
        out = _make_call(False)(x2)

    return out.reshape(N, C, 1, 1)


# TODO(synk): the "secure" 3-party-computation / PRF-prefetch machinery of the
# original module has no Pallas equivalent; only the pooling math is kernelized.


if __name__ == "__main__":
    key = jax.random.PRNGKey(0)
    N, C, H, W = 2, 4, 16, 16
    x = jax.random.normal(key, (N, C, H, W), dtype=jnp.float32)

    y = global_avg_pool_2d(x)
    jax.block_until_ready(y)

    # sanity check against plain-JAX reference
    ref = jnp.mean(x, axis=(2, 3), keepdims=True)
    assert y.shape == (N, C, 1, 1)
    assert jnp.allclose(y, ref, atol=1e-5, rtol=1e-5)

    print("KERNEL_OK")
</pallas_src>

<mosaic_0001>
module attributes {stable_mosaic.version = 11 : i64} {
  func.func @_gap_kernel(%arg0: i32, %arg1: i32, %arg2: memref<8x256xf32, #tpu.memory_space<vmem>>, %arg3: memref<8x1xf32, #tpu.memory_space<vmem>>, %arg4: memref<8x1xf32, #tpu.memory_space<vmem>>) attributes {dimension_semantics = [#tpu.dimension_semantics<parallel>, #tpu.dimension_semantics<arbitrary>], iteration_bounds = array<i64: 1, 1>, scalar_prefetch = 0 : i64, scratch_operands = 1 : i64, tpu.core_type = #tpu.core_type<tc>, window_params = [{transform_indices = @transform_0, window_bounds = array<i64: 8, 256>}, {transform_indices = @transform_1, window_bounds = array<i64: 8, 1>}]} {
    %c0_i32 = arith.constant 0 : i32
    %0 = arith.cmpi eq, %arg1, %c0_i32 : i32
    %1 = arith.extui %0 : i1 to i32
    %c0_i32_0 = arith.constant 0 : i32
    %2 = arith.cmpi ne, %1, %c0_i32_0 : i32
    scf.if %2 {
      %cst_8 = arith.constant 0.000000e+00 : f32
      %12 = vector.broadcast %cst_8 : f32 to vector<8x1xf32>
      %c0_9 = arith.constant 0 : index
      %c0_10 = arith.constant 0 : index
      %13 = vector.load %arg4[%c0_9, %c0_10] : memref<8x1xf32, #tpu.memory_space<vmem>>, vector<8x1xf32>
      tpu.vector_store %arg4[%c0_9, %c0_10], %12 {strides = array<i32>} : memref<8x1xf32, #tpu.memory_space<vmem>>, vector<8x1xf32>,
    } else {
    }
    %c0 = arith.constant 0 : index
    %c0_1 = arith.constant 0 : index
    %3 = vector.load %arg4[%c0, %c0_1] : memref<8x1xf32, #tpu.memory_space<vmem>>, vector<8x1xf32>
    %c0_2 = arith.constant 0 : index
    %c0_3 = arith.constant 0 : index
    %4 = vector.load %arg2[%c0_2, %c0_3] : memref<8x256xf32, #tpu.memory_space<vmem>>, vector<8x256xf32>
    %cst = arith.constant dense<0.000000e+00> : vector<8xf32>
    %5 = vector.multi_reduction <add>, %4, %cst [1] : vector<8x256xf32> to vector<8xf32>
    %6 = vector.shape_cast %5 : vector<8xf32> to vector<8x1xf32>
    %7 = arith.addf %3, %6 : vector<8x1xf32>
    %c0_4 = arith.constant 0 : index
    %c0_5 = arith.constant 0 : index
    %8 = vector.load %arg4[%c0_4, %c0_5] : memref<8x1xf32, #tpu.memory_space<vmem>>, vector<8x1xf32>
    tpu.vector_store %arg4[%c0_4, %c0_5], %7 {strides = array<i32>} : memref<8x1xf32, #tpu.memory_space<vmem>>, vector<8x1xf32>,
    %c0_i32_6 = arith.constant 0 : i32
    %9 = arith.cmpi eq, %arg1, %c0_i32_6 : i32
    %10 = arith.extui %9 : i1 to i32
    %c0_i32_7 = arith.constant 0 : i32
    %11 = arith.cmpi ne, %10, %c0_i32_7 : i32
    scf.if %11 {
      %c0_8 = arith.constant 0 : index
      %c0_9 = arith.constant 0 : index
      %12 = vector.load %arg4[%c0_8, %c0_9] : memref<8x1xf32, #tpu.memory_space<vmem>>, vector<8x1xf32>
      %cst_10 = arith.constant 3.906250e-03 : f32
      %13 = vector.broadcast %cst_10 : f32 to vector<8x1xf32>
      %14 = arith.mulf %12, %13 : vector<8x1xf32>
      %c0_11 = arith.constant 0 : index
      %c0_12 = arith.constant 0 : index
      %15 = vector.load %arg3[%c0_11, %c0_12] : memref<8x1xf32, #tpu.memory_space<vmem>>, vector<8x1xf32>
      tpu.vector_store %arg3[%c0_11, %c0_12], %14 {strides = array<i32>} : memref<8x1xf32, #tpu.memory_space<vmem>>, vector<8x1xf32>,
    } else {
    }
    return
  }
  func.func @transform_0(%arg0: i32, %arg1: i32) -> (i32, i32) {
    %c0_i32 = arith.constant 0 : i32
    return %arg0, %arg1 : i32, i32
  }
  func.func @transform_1(%arg0: i32, %arg1: i32) -> (i32, i32) {
    %c0_i32 = arith.constant 0 : i32
    %c0_i32_0 = arith.constant 0 : i32
    return %arg0, %c0_i32 : i32, i32
  }
}

</mosaic_0001>

<bundles_post_ra>
// kernel: tpu_custom_call.1
= control target key start
LH: loop header
LB: loop body
LE: loop exit
PB: predicated region body
PF: predicated region fallthrough
CT: control target
= control target key end

     0   :  { %6 = vsyncpa [#allocation4], 0  ;;  %s76_s9 = smov [#allocation3]   ;;  %s94_s0 = inlined_call_operand.hbm [shape: f32[8,256], index: 0, kind: input, shape index: {}]   ;;  %s95_s1 = inlined_call_operand.vmem [shape: f32[8,1], index: 1, kind: output, shape index: {}]  }
   0x1   :  { %s12_s8 = sshll.u32 %s94_s0, 4  ;;  %s14_s10 = sshll.u32 %s76_s9, 4  ;;  %s13_s8 = int_to_ptr.hbm [resolvable:$true] %s12_s8  ;;  %s15_s10 = int_to_ptr.vmem [resolvable:$true] %s14_s10 }
   0x2   :  { %17 = dma.hbm_to_vmem [thread:$0]  %s13_s8, 256, %s15_s10, [#allocation4]  }
   0x3   :  { %74 = dma.done.wait [#allocation4], 256  }
   0x4   :  { %75 = vsyncadd [#allocation4], 4294967040  ;;  %vm26_vm0 = vcmask 7168   ;;  %v77_v0 = vmov 0.0   ;;  %v29_v1 = vld [vmem:[#allocation3] sm:$0xff]  ;;  %v30_v2 = vld [vmem:[#allocation3 + $0x8] sm:$0xff] }
   0x5   :  { %27 = vst.msk [vmem:[#allocation2] sm:$0xff] %vm26_vm0, %v77_v0  ;;  %v31_v3 = vadd.f32 %v30_v2, %v29_v1 }
   0x7   :  { %32 = vadd.xlane.f32.xlu0 %v31_v3 }
   0xc   :  { %v28_v4 = vld [vmem:[#allocation2] sm:$0xff] }
  0x7a   :  { %v33_v5 = vpop.xlane.xlu0 %32 }
  0x7b   :  { %v34_v6 = vadd.f32 %v33_v5, %v28_v4 }
  0x7d   :  { %36 = vst.msk [vmem:[#allocation2] sm:$0xff] %vm26_vm0, %v34_v6 }
  0x84   :  { %v40_v7 = vld [vmem:[#allocation2] sm:$0xff] }
  0x85   :  { %v41_v8 = vmul.f32 0.00390625, %v40_v7 }
  0x87   :  { %42 = vst.msk [vmem:[%s95_s1] sm:$0xff] %vm26_vm0, %v41_v8 }
  0x88   :  { %47 = vsyncpa [#allocation4], 1 }

</bundles_post_ra>
